<compile_context>
chip_gen: v6e
topology: v6e:2x2x1
jax: 0.10.0
libtpu: 0.0.40
codegen_flags: <defaults>
</compile_context>

<pallas_src>
import jax
import jax.numpy as jnp
from jax import lax
from jax.experimental import pallas as pl
from jax.experimental.pallas import tpu as pltpu

NEG_SLOPE = 0.01  # F.leaky_relu default


def _round_up(a, m):
    return (a + m - 1) // m * m


def _row_align(dtype):
    # Minimum sublane packing: f32 -> 8, bf16 -> 16, int8/fp8 -> 32.
    return max(8, 32 // jnp.dtype(dtype).itemsize)


def _mlp_kernel_dout1(x_ref, w1_ref, b1_ref, w2t_ref, b2_ref, out_ref):
    """Tile kernel for output_dim == 1, lane-dense (1, tile_m) output."""
    # Layer 1 on the MXU: native-dtype operands, f32 accumulate.
    h = jnp.dot(x_ref[...], w1_ref[...], preferred_element_type=jnp.float32)
    h = h + b1_ref[...].astype(jnp.float32)
    h = jnp.maximum(h, NEG_SLOPE * h)                     # leaky_relu, one VALU op

    # Layer 2 (single output feature): (1,H) x (tile_m,H)^T -> (1, tile_m).
    # Native-dtype MXU matmul (layer 2 is tiny next to layer 1); keeps the
    # store lane-dense instead of a (tile_m, 1) masked-store column.
    o = lax.dot_general(
        w2t_ref[...], h.astype(w2t_ref.dtype),
        dimension_numbers=(((1,), (1,)), ((), ())),
        preferred_element_type=jnp.float32)               # (1, tile_m)
    o = o + b2_ref[...].astype(jnp.float32)               # (1,1) broadcast over lanes
    out_ref[...] = o.astype(out_ref.dtype)


def _mlp_kernel_general(x_ref, w1_ref, b1_ref, w2_ref, b2_ref, out_ref):
    """Tile kernel for output_dim > 1: both layers on the MXU, native dtype."""
    h = jnp.dot(x_ref[...], w1_ref[...], preferred_element_type=jnp.float32)
    h = h + b1_ref[...].astype(jnp.float32)
    h = jnp.maximum(h, NEG_SLOPE * h)
    o = jnp.dot(h.astype(w2_ref.dtype), w2_ref[...],
                preferred_element_type=jnp.float32)
    o = o + b2_ref[...].astype(jnp.float32)
    out_ref[...] = o.astype(out_ref.dtype)


def attention_forward(x, w1, b1, w2, b2, *, tile_m=None, compute_dtype=None):
    """x: [N, D_in]; w1: [D_in, H]; b1: [1, H]; w2: [H, D_out]; b2: [1, D_out].

    tile_m is a hint; it is rounded to hardware-friendly sizes. compute_dtype
    (e.g. jnp.bfloat16) optionally casts matmul operands at the MXU boundary
    (f32 accumulation is kept) for ~3x MXU throughput on f32 inputs.
    """
    n, d_in = x.shape
    hidden = w1.shape[1]
    d_out = w2.shape[1]

    if compute_dtype is not None:
        x = x.astype(compute_dtype)
        w1 = w1.astype(compute_dtype)
        w2 = w2.astype(compute_dtype)

    align = _row_align(x.dtype)

    # --- Row-tile selection ------------------------------------------------
    if tile_m is None:
        if n >= 2048:
            tile_m = 512          # many 128-aligned tiles; keeps both v7x TCs busy
        elif n > 256:
            tile_m = _round_up(pl.cdiv(n, 2), 128)   # 2 tiles -> one per TC on v7x
        else:
            tile_m = _round_up(n, align)             # single small tile
    else:
        tile_m = _round_up(max(int(tile_m), align), align)
    if d_out == 1 and pl.cdiv(n, tile_m) > 1 and tile_m % 128 != 0:
        # Lane-dense output blocks (1, tile_m) need a 128-multiple width.
        tile_m = _round_up(tile_m, 128)
    num_tiles = pl.cdiv(n, tile_m)

    # --- Explicit VMEM budget ----------------------------------------------
    itemsize = jnp.dtype(x.dtype).itemsize
    x_tile_b = tile_m * d_in * itemsize
    out_tile_b = tile_m * d_out * itemsize
    resident_b = sum(int(a.size) * jnp.dtype(a.dtype).itemsize
                     for a in (w1, b1, w2, b2))
    interm_b = 3 * tile_m * hidden * 4              # f32 h (+ headroom)
    need = 2 * (x_tile_b + out_tile_b) + 2 * resident_b + interm_b + (2 << 20)
    vmem_limit = min(max(int(need * 1.25), 16 << 20), 64 << 20)

    cparams = pltpu.CompilerParams(
        dimension_semantics=("parallel",),          # row tiles are independent
        vmem_limit_bytes=vmem_limit,
    )

    x_spec = pl.BlockSpec((tile_m, d_in), lambda i: (i, 0))
    # Weights & biases: constant block index -> DMA'd once, resident in VMEM.
    w1_spec = pl.BlockSpec(w1.shape, lambda i: (0, 0))
    b1_spec = pl.BlockSpec(b1.shape, lambda i: (0, 0))
    b2_spec = pl.BlockSpec(b2.shape, lambda i: (0, 0))

    if d_out == 1:
        w2_arg = w2.T                               # (1, H) row for the NT matmul
        w2_spec = pl.BlockSpec(w2_arg.shape, lambda i: (0, 0))
        out_row = pl.pallas_call(
            _mlp_kernel_dout1,
            out_shape=jax.ShapeDtypeStruct((1, num_tiles * tile_m), x.dtype),
            grid=(num_tiles,),
            in_specs=[x_spec, w1_spec, b1_spec, w2_spec, b2_spec],
            out_specs=pl.BlockSpec((1, tile_m), lambda i: (0, i)),
            compiler_params=cparams,
        )(x, w1, b1, w2_arg, b2)
        # Lane-dense (1, N_pad) row -> (n, 1) column (tiny host-side reshape).
        return out_row.reshape(-1)[:n].reshape(n, 1)

    w2_spec = pl.BlockSpec(w2.shape, lambda i: (0, 0))
    out = pl.pallas_call(
        _mlp_kernel_general,
        out_shape=jax.ShapeDtypeStruct((n, d_out), x.dtype),
        grid=(num_tiles,),
        in_specs=[x_spec, w1_spec, b1_spec, w2_spec, b2_spec],
        out_specs=pl.BlockSpec((tile_m, d_out), lambda i: (i, 0)),
        compiler_params=cparams,
    )(x, w1, b1, w2, b2)
    return out


def init_attention_params(key, input_dim, hidden_dim=None, output_dim=1,
                          num_layers=2, dtype=jnp.float32):
    """nn.Linear-style uniform(-1/sqrt(fan_in), 1/sqrt(fan_in)) init.

    Only num_layers == 2 (the module default) is materialized as a fused
    Pallas kernel. Weights are returned already transposed to [in, out].
    """
    if hidden_dim is None:
        hidden_dim = input_dim
    assert num_layers == 2, "fused kernel implements the default 2-layer MLP"

    k1, k2, k3, k4 = jax.random.split(key, 4)
    bound1 = float(input_dim) ** -0.5
    bound2 = float(hidden_dim) ** -0.5

    w1 = jax.random.uniform(k1, (input_dim, hidden_dim), jnp.float32,
                            -bound1, bound1).astype(dtype)
    b1 = jax.random.uniform(k2, (1, hidden_dim), jnp.float32,
                            -bound1, bound1).astype(dtype)
    w2 = jax.random.uniform(k3, (hidden_dim, output_dim), jnp.float32,
                            -bound2, bound2).astype(dtype)
    b2 = jax.random.uniform(k4, (1, output_dim), jnp.float32,
                            -bound2, bound2).astype(dtype)
    return w1, b1, w2, b2


def reference_forward(x, w1, b1, w2, b2):
    x32 = x.astype(jnp.float32)
    h = x32 @ w1.astype(jnp.float32) + b1.astype(jnp.float32)
    h = jnp.where(h >= 0, h, NEG_SLOPE * h)
    o = h @ w2.astype(jnp.float32) + b2.astype(jnp.float32)
    return o.astype(x.dtype)


if __name__ == "__main__":
    key = jax.random.PRNGKey(0)
    kx, kp, kx2, kp2, kx3, kp3, kx4, kp4 = jax.random.split(key, 8)

    # Case 1: module-default small shapes (input_dim=32, output_dim=1), single tile.
    N, D = 8, 32
    x = jax.random.normal(kx, (N, D), jnp.float32)
    p1 = init_attention_params(kp, D, output_dim=1)
    out = jax.block_until_ready(attention_forward(x, *p1))
    ref = reference_forward(x, *p1)
    assert out.shape == (N, 1), out.shape
    assert jnp.allclose(out, ref, atol=1e-4, rtol=1e-4), "case1 mismatch vs reference"

    # Case 2: multiple row tiles + ragged last block, no host-side padding.
    N2, D2 = 200, 64
    x2 = jax.random.normal(kx2, (N2, D2), jnp.float32)
    p2 = init_attention_params(kp2, D2, output_dim=1)
    out2 = jax.block_until_ready(attention_forward(x2, *p2, tile_m=64))
    ref2 = reference_forward(x2, *p2)
    assert out2.shape == (N2, 1), out2.shape
    assert jnp.allclose(out2, ref2, atol=1e-4, rtol=1e-4), "case2 mismatch vs reference"

    # Case 3: bf16 end-to-end (native-dtype MXU path), multi-tile + ragged tail.
    N3, D3 = 300, 128
    x3 = jax.random.normal(kx3, (N3, D3), jnp.float32).astype(jnp.bfloat16)
    p3 = init_attention_params(kp3, D3, output_dim=1, dtype=jnp.bfloat16)
    out3 = jax.block_until_ready(attention_forward(x3, *p3))
    ref3 = reference_forward(x3, *p3)
    assert out3.shape == (N3, 1), out3.shape
    assert jnp.allclose(out3.astype(jnp.float32), ref3.astype(jnp.float32),
                        atol=5e-2, rtol=5e-2), "case3 mismatch vs reference"

    # Case 4: output_dim > 1 (general two-matmul kernel) with a partial last block.
    N4, D4, DO4 = 100, 64, 128
    x4 = jax.random.normal(kx4, (N4, D4), jnp.float32)
    p4 = init_attention_params(kp4, D4, output_dim=DO4)
    out4 = jax.block_until_ready(attention_forward(x4, *p4, tile_m=64))
    ref4 = reference_forward(x4, *p4)
    assert out4.shape == (N4, DO4), out4.shape
    assert jnp.allclose(out4, ref4, atol=1e-4, rtol=1e-4), "case4 mismatch vs reference"

    print("KERNEL_OK")
</pallas_src>

<mosaic_0001>
module attributes {stable_mosaic.version = 11 : i64} {
  func.func @_mlp_kernel_dout1(%arg0: i32, %arg1: memref<8x32xf32, #tpu.memory_space<vmem>>, %arg2: memref<32x32xf32, #tpu.memory_space<vmem>>, %arg3: memref<1x32xf32, #tpu.memory_space<vmem>>, %arg4: memref<1x32xf32, #tpu.memory_space<vmem>>, %arg5: memref<1x1xf32, #tpu.memory_space<vmem>>, %arg6: memref<1x8xf32, #tpu.memory_space<vmem>>) attributes {dimension_semantics = [#tpu.dimension_semantics<parallel>], iteration_bounds = array<i64: 1>, scalar_prefetch = 0 : i64, scratch_operands = 0 : i64, tpu.core_type = #tpu.core_type<tc>, window_params = [{transform_indices = @transform_0, window_bounds = array<i64: 8, 32>}, {pipeline_mode = #tpu.pipeline_mode<synchronous>, transform_indices = @transform_1, window_bounds = array<i64: 32, 32>}, {pipeline_mode = #tpu.pipeline_mode<synchronous>, transform_indices = @transform_2, window_bounds = array<i64: 1, 32>}, {pipeline_mode = #tpu.pipeline_mode<synchronous>, transform_indices = @transform_3, window_bounds = array<i64: 1, 32>}, {pipeline_mode = #tpu.pipeline_mode<synchronous>, transform_indices = @transform_4, window_bounds = array<i64: 1, 1>}, {transform_indices = @transform_5, window_bounds = array<i64: 1, 8>}]} {
    %c0 = arith.constant 0 : index
    %c0_0 = arith.constant 0 : index
    %0 = vector.load %arg1[%c0, %c0_0] : memref<8x32xf32, #tpu.memory_space<vmem>>, vector<8x32xf32>
    %c0_1 = arith.constant 0 : index
    %c0_2 = arith.constant 0 : index
    %1 = vector.load %arg2[%c0_1, %c0_2] : memref<32x32xf32, #tpu.memory_space<vmem>>, vector<32x32xf32>
    %cst = arith.constant dense<0.000000e+00> : vector<8x32xf32>
    %2 = tpu.matmul %0, %1, %cst {dimension_numbers = #tpu.dot_dimension_numbers<[1], [0], [0], [1], [0, 0, 1, 1], [], []>} : vector<8x32xf32>, vector<32x32xf32>, vector<8x32xf32> -> vector<8x32xf32>
    %c0_3 = arith.constant 0 : index
    %c0_4 = arith.constant 0 : index
    %3 = vector.load %arg3[%c0_3, %c0_4] : memref<1x32xf32, #tpu.memory_space<vmem>>, vector<1x32xf32>
    %4 = vector.broadcast %3 : vector<1x32xf32> to vector<8x32xf32>
    %5 = arith.addf %2, %4 : vector<8x32xf32>
    %cst_5 = arith.constant 0.00999999977 : f32
    %6 = vector.broadcast %cst_5 : f32 to vector<8x32xf32>
    %7 = arith.mulf %6, %5 : vector<8x32xf32>
    %8 = arith.maximumf %5, %7 : vector<8x32xf32>
    %c0_6 = arith.constant 0 : index
    %c0_7 = arith.constant 0 : index
    %9 = vector.load %arg4[%c0_6, %c0_7] : memref<1x32xf32, #tpu.memory_space<vmem>>, vector<1x32xf32>
    %cst_8 = arith.constant dense<0.000000e+00> : vector<1x8xf32>
    %10 = tpu.matmul %9, %8, %cst_8 {dimension_numbers = #tpu.dot_dimension_numbers<[1], [1], [0], [0], [0, 0, 1, 0], [], []>} : vector<1x32xf32>, vector<8x32xf32>, vector<1x8xf32> -> vector<1x8xf32>
    %c0_9 = arith.constant 0 : index
    %c0_10 = arith.constant 0 : index
    %11 = vector.load %arg5[%c0_9, %c0_10] : memref<1x1xf32, #tpu.memory_space<vmem>>, vector<1x1xf32>
    %12 = vector.broadcast %11 : vector<1x1xf32> to vector<1x8xf32>
    %13 = arith.addf %10, %12 : vector<1x8xf32>
    %c0_11 = arith.constant 0 : index
    %c0_12 = arith.constant 0 : index
    %14 = vector.load %arg6[%c0_11, %c0_12] : memref<1x8xf32, #tpu.memory_space<vmem>>, vector<1x8xf32>
    tpu.vector_store %arg6[%c0_11, %c0_12], %13 {strides = array<i32>} : memref<1x8xf32, #tpu.memory_space<vmem>>, vector<1x8xf32>,
    return
  }
  func.func @transform_0(%arg0: i32) -> (i32, i32) {
    %c0_i32 = arith.constant 0 : i32
    %c0_i32_0 = arith.constant 0 : i32
    return %arg0, %c0_i32 : i32, i32
  }
  func.func @transform_1(%arg0: i32) -> (i32, i32) {
    %c0_i32 = arith.constant 0 : i32
    %c0_i32_0 = arith.constant 0 : i32
    %c0_i32_1 = arith.constant 0 : i32
    return %c0_i32, %c0_i32_0 : i32, i32
  }
  func.func @transform_2(%arg0: i32) -> (i32, i32) {
    %c0_i32 = arith.constant 0 : i32
    %c0_i32_0 = arith.constant 0 : i32
    %c0_i32_1 = arith.constant 0 : i32
    return %c0_i32, %c0_i32_0 : i32, i32
  }
  func.func @transform_3(%arg0: i32) -> (i32, i32) {
    %c0_i32 = arith.constant 0 : i32
    %c0_i32_0 = arith.constant 0 : i32
    %c0_i32_1 = arith.constant 0 : i32
    return %c0_i32, %c0_i32_0 : i32, i32
  }
  func.func @transform_4(%arg0: i32) -> (i32, i32) {
    %c0_i32 = arith.constant 0 : i32
    %c0_i32_0 = arith.constant 0 : i32
    %c0_i32_1 = arith.constant 0 : i32
    return %c0_i32, %c0_i32_0 : i32, i32
  }
  func.func @transform_5(%arg0: i32) -> (i32, i32) {
    %c0_i32 = arith.constant 0 : i32
    %c0_i32_0 = arith.constant 0 : i32
    return %c0_i32, %arg0 : i32, i32
  }
}

</mosaic_0001>

<bundles_post_ra>
// kernel: tpu_custom_call.1
= control target key start
LH: loop header
LB: loop body
LE: loop exit
PB: predicated region body
PF: predicated region fallthrough
CT: control target
= control target key end

     0   :  { %s403_s0 = inlined_call_operand.hbm [shape: f32[8,32], index: 0, kind: input, shape index: {}]   ;;  %s404_s1 = inlined_call_operand.hbm [shape: f32[32,32], index: 1, kind: input, shape index: {}]   ;;  %s405_s2 = inlined_call_operand.vmem [shape: f32[1,32], index: 2, kind: input, shape index: {}]   ;;  %s406_s3 = inlined_call_operand.vmem [shape: f32[1,32], index: 3, kind: input, shape index: {}]   ;;  %s407_s4 = inlined_call_operand.<no memory space> [shape: f32[1,1], index: 4, kind: input, shape index: {}]   ;;  %s408_s5 = inlined_call_operand.hbm [shape: f32[1,8], index: 5, kind: output, shape index: {}]  }
   0x1   :  { %v10_v0 = vstv %s407_s4 }
   0x2   :  { %11 = vst [vmem:[#allocation2] sm:$0x1] %v10_v0 }
   0x3   :  { %12 = vsyncpa [#allocation4], 0 }
   0x4   :  { %13 = vsyncpa [#allocation7], 0 }
   0x5   :  { %14 = vsyncpa [#allocation5], 0  ;;  %s344_s20 = smov [#allocation3]   ;;  %s345_s22 = smov [#allocation6]  }
   0x6   :  { %s21_s21 = sshll.u32 %s344_s20, 4  ;;  %s30_s23 = sshll.u32 %s345_s22, 4  ;;  %s22_s21 = int_to_ptr.vmem [resolvable:$true] %s21_s21  ;;  %s31_s23 = int_to_ptr.vmem [resolvable:$true] %s30_s23 }
   0x7   :  { %s286_s24 = scalar_lea.vmem %s22_s21, 128  ;;  %p291_p1 = scmp.lt.s32.totalorder %s22_s21, %s22_s21 }
   0x8   :  { %p287_p0 = scmp.ne.s32.totalorder %s22_s21, %s286_s24  ;;  %p292_p2 = scmp.lt.s32.totalorder %s286_s24, %s286_s24 }
   0xa   :  { %p293_p3 = por %p292_p2, %p291_p1 }
   0xc   :  { %p294_p4 = pnand %p293_p3, %p287_p0 }
   0xe   :  { %297 = shalt.err (!%p294_p4)
}
   0xf   :  { %24 = dma.hbm_to_vmem [thread:$0]  %s403_s0, 128, %s22_s21, [#allocation4]  }
  0x10   :  { %s306_s4 = scalar_lea.vmem %s31_s23, 512  ;;  %p311_p6 = scmp.lt.s32.totalorder %s31_s23, %s31_s23 }
  0x11   :  { %p307_p5 = scmp.ne.s32.totalorder %s31_s23, %s306_s4  ;;  %p312_p7 = scmp.lt.s32.totalorder %s306_s4, %s306_s4 }
  0x13   :  { %p313_p8 = por %p312_p7, %p311_p6 }
  0x15   :  { %p314_p9 = pnand %p313_p8, %p307_p5 }
  0x17   :  { %317 = shalt.err (!%p314_p9)
}
  0x18   :  { %s346_s27 = smov 128   ;;  %s347_s28 = smov 8  }
  0x19   :  { %36 = dma.hbm_to_vmem [thread:$0]  %s404_s1, 512, %s31_s23, [#allocation7], %s346_s27, %s346_s27, %s347_s28  }
  0x1a   :  { %338 = dma.done.wait [#allocation4], 128  }
  0x1b   :  { %339 = vsyncadd [#allocation4], 4294967168 }
  0x1c   :  { %340 = dma.done.wait [#allocation7], 512  }
  0x1d   :  { %341 = vsyncadd [#allocation7], 4294966784  ;;  %v348_v1 = vmov 0.0   ;;  %vm349_vm0 = vmmov 0   ;;  %v53_v2 = vld [vmem:[#allocation6 + $0x18] sm:$0xff]  ;;  %v52_v3 = vld [vmem:[#allocation6 + $0x10] sm:$0xff]  ;;  %v144_v16 = vlaneseq }
  0x1e   :  { %253 = vmatprep.subr.mxu0 %v348_v1  ;;  %261 = vmatprep.mubr.msk.f32.mxu0 %vm349_vm0, %v348_v1  ;;  %v51_v4 = vld [vmem:[#allocation6 + $0x8] sm:$0xff]  ;;  %v50_v5 = vld [vmem:[#allocation6] sm:$0xff]  ;;  %v49_v6 = vld [vmem:[#allocation3] sm:$0xff]  ;;  %vm61_vm1 = vcmask 261120   ;;  %v350_v8 = vmov 0   ;;  %s351_s8 = smov [#allocation8]  }
  0x1f   :  { %264 = vmatprep.subr.mxu1 %v348_v1  ;;  %266 = vmatprep.mubr.msk.f32.mxu1 %vm349_vm0, %v348_v1  ;;  %v138_v7 = vld [vmem:[#allocation2] sm:$0x1]  ;;  %v145_v17 = vshrl.u32 %v144_v16, 7  ;;  %vm224_vm2 = vcmask 57344  }
  0x20   :  { %254 = vmatpush3.msra.mxu0 %v53_v2  ;;  %277 = vset.pattern.permute.xlu0 %v350_v8  ;;  %v242_v9 = vld [vmem:[%s405_s2] ss:$0 sm:$0xff]  ;;  %s232_s2 = sshll.u32 %s351_s8, 4  ;;  %s233_s2 = int_to_ptr.vmem [resolvable:$true] %s232_s2 }
  0x21   :  { %255 = vmatprep.subr.mxu0 %v348_v1  ;;  %141 = vperm.xlu0 %277, %v138_v7   ;;  %v137_v15 = vld [vmem:[%s406_s3] sm:$0x1]  ;;  %v146_v18 = vsub.s32 0, %v145_v17  ;;  %s318_s9 = scalar_lea.vmem %s233_s2, 16  ;;  %s322_s10 = scalar_lea.vmem %s233_s2, 32 }
  0x22   :  { %256 = vmatpush3.msra.mxu0 %v52_v3  ;;  %p319_p10 = scmp.ne.s32.totalorder %s233_s2, %s318_s9  ;;  %p323_p11 = scmp.lt.s32.totalorder %s233_s2, %s233_s2 }
  0x23   :  { %257 = vmatprep.subr.mxu0 %v348_v1  ;;  %p324_p12 = scmp.lt.s32.totalorder %s322_s10, %s318_s9 }
  0x24   :  { %258 = vmatpush3.msra.mxu0 %v51_v4 }
  0x25   :  { %259 = vmatprep.subr.mxu0 %v348_v1  ;;  %p325_p13 = por %p324_p12, %p323_p11 }
  0x26   :  { %260 = vmatpush3.msra.mxu0 %v50_v5 }
  0x27   :  { %262 = vmatmul.mubr.msk.f32.vlgmr.msra.gmra.mxu0 %vm61_vm1, %v49_v6  ;;  %p326_p0 = pnand %p325_p13, %p319_p10 }
  0x9c   :  { %v142_v19 = vpop.permute.xlu0 %141 }
  0x9d   :  { %v147_v20 = vrot.slane %v142_v19, %v146_v18 }
  0xe7   :  { %v131_v10 = vpop.f32.mrf.mxu0 }
  0xe8   :  { %v132_v11 = vadd.f32 %v242_v9, %v131_v10 }
  0xe9   :  { %v263_v12 = vpop.f32.mrf.mxu0 }
  0xea   :  { %v135_v13 = vmul.f32 0.01, %v132_v11 }
  0xec   :  { %v136_v14 = vmax.f32 %v132_v11, %v135_v13 }
  0xee   :  { %265 = vmatpush3.xpose.msk.msra.mxu1 %vm61_vm1, %v136_v14 }
  0xf1   :  { %267 = vmatmul.mubr.msk.f32.vlgmr.msra.gmra.mxu1 %vm61_vm1, %v137_v15 }
 0x1b1   :  { %v220_v21 = vpop.f32.mrf.mxu1 }
 0x1b2   :  { %v221_v22 = vadd.f32 %v220_v21, %v147_v20 }
 0x1b3   :  { %v268_v23 = vpop.f32.mrf.mxu1 }
 0x1b4   :  { %225 = vst.msk [vmem:[#allocation8] sm:$0x1] %vm224_vm2, %v221_v22 }
 0x1b5   :  { %329 = shalt.err (!%p326_p0)
}
 0x1b6   :  { %235 = dma.vmem_to_hbm [thread:$0]  %s233_s2, 16, %s408_s5, [#allocation5]  }
 0x1b7   :  { %342 = dma.done.wait [#allocation5], 16  }
 0x1b8   :  { %343 = vsyncadd [#allocation5], 4294967280 }
 0x1b9   :  { %239 = vsyncpa [#allocation4], 1 }
 0x1ba   :  { %240 = vsyncpa [#allocation7], 1 }
 0x1bb   :  { %241 = vsyncpa [#allocation5], 1 }

</bundles_post_ra>
